<compile_context>
chip_gen: v7x
topology: tpu7x:2x2x1
jax: 0.10.0
libtpu: 0.0.40
codegen_flags: <defaults>
</compile_context>

<pallas_src>
import functools

import jax
import jax.numpy as jnp
from jax.experimental import pallas as pl
from jax.experimental.pallas import tpu as pltpu


def _fc_head_kernel(x_ref, w1_ref, b1_ref, w2_ref, b2_ref, o_ref):
    # (tm, D_in) bf16 @ (D_in, fc_dim) bf16 -> f32 accumulation on the MXU.
    h = jnp.dot(x_ref[...], w1_ref[...], preferred_element_type=jnp.float32)
    h = jnp.maximum(h + b1_ref[...], 0.0)                      # relu(fc1), f32
    o = jnp.dot(h.astype(jnp.bfloat16), w2_ref[...],
                preferred_element_type=jnp.float32)
    o_ref[...] = jnp.maximum(o + b2_ref[...], 0.0)             # relu(fc2), f32


def _round_up(x, m):
    return (x + m - 1) // m * m


def _vmem_budget_bytes(tm, d_in, fc_dim):
    bf16, f32 = 2, 4
    weights = (d_in * fc_dim + fc_dim * fc_dim) * bf16
    biases = 2 * fc_dim * f32
    act_tiles = tm * d_in * bf16 + tm * fc_dim * f32
    interm = tm * fc_dim * (f32 + bf16)
    # 2x for double buffering + headroom; floor 16 MiB, stay under v7x's 64 MiB.
    budget = 2 * (weights + biases + act_tiles) + interm + (4 << 20)
    return min(max(budget, 16 << 20), 60 << 20)


@functools.partial(jax.jit, static_argnames=("tile_m",))
def fast_rcnn_fc_head(x_nchw, w1, b1, w2, b2, *, tile_m=128):
    """x_nchw: (N, C, H, W). w1: (C*H*W, fc_dim), w2: (fc_dim, fc_dim)."""
    n = x_nchw.shape[0]
    d_in = x_nchw.shape[1] * x_nchw.shape[2] * x_nchw.shape[3]
    fc_dim = w2.shape[1]

    # torch.flatten(x, start_dim=1) (row-major, identical element ordering).
    x_flat = x_nchw.reshape(n, d_in)

    # Pad the ROI axis so blocks are (8,128)-aligned and stores are unmasked.
    tm = tile_m
    n_pad = max(_round_up(n, tm), tm)
    if n_pad != n:
        x_flat = jnp.pad(x_flat, ((0, n_pad - n), (0, 0)))

    # bf16 MXU operands; biases kept f32 for the f32 epilogue.
    x_bf16 = x_flat.astype(jnp.bfloat16)
    w1_bf16 = w1.astype(jnp.bfloat16)
    w2_bf16 = w2.astype(jnp.bfloat16)
    b1_f32 = b1.astype(jnp.float32).reshape(1, fc_dim)
    b2_f32 = b2.astype(jnp.float32).reshape(1, fc_dim)

    out = pl.pallas_call(
        _fc_head_kernel,
        out_shape=jax.ShapeDtypeStruct((n_pad, fc_dim), jnp.float32),
        grid_spec=pltpu.PrefetchScalarGridSpec(
            num_scalar_prefetch=0,
            grid=(n_pad // tm,),
            in_specs=[
                pl.BlockSpec((tm, d_in), lambda i: (i, 0)),        # x: streamed
                pl.BlockSpec((d_in, fc_dim), lambda i: (0, 0)),    # w1: resident
                pl.BlockSpec((1, fc_dim), lambda i: (0, 0)),       # b1: resident
                pl.BlockSpec((fc_dim, fc_dim), lambda i: (0, 0)),  # w2: resident
                pl.BlockSpec((1, fc_dim), lambda i: (0, 0)),       # b2: resident
            ],
            out_specs=pl.BlockSpec((tm, fc_dim), lambda i: (i, 0)),
        ),
        compiler_params=pltpu.CompilerParams(
            dimension_semantics=("parallel",),  # shards ROI tiles over v7x's 2 TCs
            vmem_limit_bytes=_vmem_budget_bytes(tm, d_in, fc_dim),
        ),
    )(x_bf16, w1_bf16, b1_f32, w2_bf16, b2_f32)

    return out[:n]


def _c2_xavier_like_init(key, fan_in, fan_out):
    # Deterministic stand-in for weight_init.c2_xavier_fill (uniform, zero bias).
    bound = jnp.sqrt(6.0 / (fan_in + fan_out))
    w = jax.random.uniform(key, (fan_in, fan_out), jnp.float32, -bound, bound)
    b = jnp.zeros((fan_out,), jnp.float32)
    return w, b


if __name__ == "__main__":
    # Synthetic module config: input_shape = ShapeSpec(channels=4, height=16,
    # width=16) -> input_size = 1024; cfg.MODEL.ROI_BOX_HEAD.FC_DIM = 128.
    N, C, H, W = 2, 4, 16, 16
    FC_DIM = 128
    input_size = C * H * W

    key = jax.random.PRNGKey(0)
    kx, k1, k2 = jax.random.split(key, 3)

    x = jax.random.normal(kx, (N, C, H, W), jnp.float32)
    w1, b1 = _c2_xavier_like_init(k1, input_size, FC_DIM)
    w2, b2 = _c2_xavier_like_init(k2, FC_DIM, FC_DIM)

    out = fast_rcnn_fc_head(x, w1, b1, w2, b2)
    out = jax.block_until_ready(out)

    # Reference in plain JAX (f32).  bf16 MXU operands -> loosened tolerance.
    ref = jnp.maximum(x.reshape(N, -1) @ w1 + b1, 0.0)
    ref = jnp.maximum(ref @ w2 + b2, 0.0)
    assert out.shape == (N, FC_DIM)
    assert jnp.allclose(out, ref, atol=5e-2, rtol=5e-2), float(
        jnp.max(jnp.abs(out - ref)))

    print("KERNEL_OK")
</pallas_src>

<mosaic_0001>
module attributes {stable_mosaic.version = 11 : i64} {
  func.func @_fc_head_kernel(%arg0: i32, %arg1: memref<128x1024xbf16, #tpu.memory_space<vmem>>, %arg2: memref<1024x128xbf16, #tpu.memory_space<vmem>>, %arg3: memref<1x128xf32, #tpu.memory_space<vmem>>, %arg4: memref<128x128xbf16, #tpu.memory_space<vmem>>, %arg5: memref<1x128xf32, #tpu.memory_space<vmem>>, %arg6: memref<128x128xf32, #tpu.memory_space<vmem>>) attributes {dimension_semantics = [#tpu.dimension_semantics<parallel>], iteration_bounds = array<i64: 1>, scalar_prefetch = 0 : i64, scratch_operands = 0 : i64, tpu.core_type = #tpu.core_type<tc>, window_params = [{transform_indices = @transform_0, window_bounds = array<i64: 128, 1024>}, {pipeline_mode = #tpu.pipeline_mode<synchronous>, transform_indices = @transform_1, window_bounds = array<i64: 1024, 128>}, {pipeline_mode = #tpu.pipeline_mode<synchronous>, transform_indices = @transform_2, window_bounds = array<i64: 1, 128>}, {pipeline_mode = #tpu.pipeline_mode<synchronous>, transform_indices = @transform_3, window_bounds = array<i64: 128, 128>}, {pipeline_mode = #tpu.pipeline_mode<synchronous>, transform_indices = @transform_4, window_bounds = array<i64: 1, 128>}, {transform_indices = @transform_5, window_bounds = array<i64: 128, 128>}]} {
    %c0 = arith.constant 0 : index
    %c0_0 = arith.constant 0 : index
    %0 = vector.load %arg1[%c0, %c0_0] : memref<128x1024xbf16, #tpu.memory_space<vmem>>, vector<128x1024xbf16>
    %c0_1 = arith.constant 0 : index
    %c0_2 = arith.constant 0 : index
    %1 = vector.load %arg2[%c0_1, %c0_2] : memref<1024x128xbf16, #tpu.memory_space<vmem>>, vector<1024x128xbf16>
    %cst = arith.constant dense<0.000000e+00> : vector<128x128xf32>
    %2 = tpu.matmul %0, %1, %cst {dimension_numbers = #tpu.dot_dimension_numbers<[1], [0], [0], [1], [0, 0, 1, 1], [], []>} : vector<128x1024xbf16>, vector<1024x128xbf16>, vector<128x128xf32> -> vector<128x128xf32>
    %c0_3 = arith.constant 0 : index
    %c0_4 = arith.constant 0 : index
    %3 = vector.load %arg3[%c0_3, %c0_4] : memref<1x128xf32, #tpu.memory_space<vmem>>, vector<1x128xf32>
    %4 = vector.broadcast %3 : vector<1x128xf32> to vector<128x128xf32>
    %5 = arith.addf %2, %4 : vector<128x128xf32>
    %cst_5 = arith.constant 0.000000e+00 : f32
    %6 = vector.broadcast %cst_5 : f32 to vector<128x128xf32>
    %7 = arith.maximumf %5, %6 : vector<128x128xf32>
    %8 = arith.truncf %7 : vector<128x128xf32> to vector<128x128xbf16>
    %c0_6 = arith.constant 0 : index
    %c0_7 = arith.constant 0 : index
    %9 = vector.load %arg4[%c0_6, %c0_7] : memref<128x128xbf16, #tpu.memory_space<vmem>>, vector<128x128xbf16>
    %cst_8 = arith.constant dense<0.000000e+00> : vector<128x128xf32>
    %10 = tpu.matmul %8, %9, %cst_8 {dimension_numbers = #tpu.dot_dimension_numbers<[1], [0], [0], [1], [0, 0, 1, 1], [], []>} : vector<128x128xbf16>, vector<128x128xbf16>, vector<128x128xf32> -> vector<128x128xf32>
    %c0_9 = arith.constant 0 : index
    %c0_10 = arith.constant 0 : index
    %11 = vector.load %arg5[%c0_9, %c0_10] : memref<1x128xf32, #tpu.memory_space<vmem>>, vector<1x128xf32>
    %12 = vector.broadcast %11 : vector<1x128xf32> to vector<128x128xf32>
    %13 = arith.addf %10, %12 : vector<128x128xf32>
    %cst_11 = arith.constant 0.000000e+00 : f32
    %14 = vector.broadcast %cst_11 : f32 to vector<128x128xf32>
    %15 = arith.maximumf %13, %14 : vector<128x128xf32>
    %c0_12 = arith.constant 0 : index
    %c0_13 = arith.constant 0 : index
    %16 = vector.load %arg6[%c0_12, %c0_13] : memref<128x128xf32, #tpu.memory_space<vmem>>, vector<128x128xf32>
    tpu.vector_store %arg6[%c0_12, %c0_13], %15 {strides = array<i32>} : memref<128x128xf32, #tpu.memory_space<vmem>>, vector<128x128xf32>,
    return
  }
  func.func @transform_0(%arg0: i32) -> (i32, i32) {
    %c0_i32 = arith.constant 0 : i32
    %c0_i32_0 = arith.constant 0 : i32
    return %arg0, %c0_i32 : i32, i32
  }
  func.func @transform_1(%arg0: i32) -> (i32, i32) {
    %c0_i32 = arith.constant 0 : i32
    %c0_i32_0 = arith.constant 0 : i32
    %c0_i32_1 = arith.constant 0 : i32
    return %c0_i32, %c0_i32_0 : i32, i32
  }
  func.func @transform_2(%arg0: i32) -> (i32, i32) {
    %c0_i32 = arith.constant 0 : i32
    %c0_i32_0 = arith.constant 0 : i32
    %c0_i32_1 = arith.constant 0 : i32
    return %c0_i32, %c0_i32_0 : i32, i32
  }
  func.func @transform_3(%arg0: i32) -> (i32, i32) {
    %c0_i32 = arith.constant 0 : i32
    %c0_i32_0 = arith.constant 0 : i32
    %c0_i32_1 = arith.constant 0 : i32
    return %c0_i32, %c0_i32_0 : i32, i32
  }
  func.func @transform_4(%arg0: i32) -> (i32, i32) {
    %c0_i32 = arith.constant 0 : i32
    %c0_i32_0 = arith.constant 0 : i32
    %c0_i32_1 = arith.constant 0 : i32
    return %c0_i32, %c0_i32_0 : i32, i32
  }
  func.func @transform_5(%arg0: i32) -> (i32, i32) {
    %c0_i32 = arith.constant 0 : i32
    %c0_i32_0 = arith.constant 0 : i32
    return %arg0, %c0_i32 : i32, i32
  }
}

</mosaic_0001>

<bundles_post_ra>
// kernel: fast_rcnn_fc_head.1
= control target key start
LH: loop header
LB: loop body
LE: loop exit
PB: predicated region body
PF: predicated region fallthrough
CT: control target
= control target key end

     0   :  { %s2628_s1 = inlined_call_operand.vmem [shape: bf16[1024,128], index: 1, kind: input, shape index: {}]   ;;  %s2629_s0 = inlined_call_operand.vmem [shape: bf16[128,1024], index: 0, kind: input, shape index: {}]   ;;  %s2630_s3 = inlined_call_operand.vmem [shape: bf16[128,128], index: 3, kind: input, shape index: {}]   ;;  %s2631_s2 = inlined_call_operand.vmem [shape: f32[1,128], index: 2, kind: input, shape index: {}]   ;;  %s2632_s4 = inlined_call_operand.vmem [shape: f32[1,128], index: 4, kind: input, shape index: {}]   ;;  %s2633_s5 = inlined_call_operand.vmem [shape: f32[128,128], index: 5, kind: output, shape index: {}]  }
   0x1   :  { %v1998_v0 = vld [vmem:[%s2628_s1 + $0x40] sm:$0xff]   ;;  %v2002_v4 = vld [vmem:[%s2628_s1 + $0x48] sm:$0xff]   ;;  %v2006_v8 = vld [vmem:[%s2628_s1 + $0x50] sm:$0xff]  }
   0x2   :  { %v1999_v1 = vld [vmem:[%s2628_s1 + $0xc0] sm:$0xff]   ;;  %1678 = vmatprep.subr.bf16.mxu0 %v1998_v0  ;;  %v2003_v5 = vld [vmem:[%s2628_s1 + $0xc8] sm:$0xff]   ;;  %v2007_v9 = vld [vmem:[%s2628_s1 + $0xd0] sm:$0xff]  }
   0x3   :  { %v2000_v2 = vld [vmem:[%s2628_s1] sm:$0xff]   ;;  %1742 = vmatprep.subr.bf16.mxu1 %v1999_v1  ;;  %v2004_v6 = vld [vmem:[%s2628_s1 + $0x8] sm:$0xff]   ;;  %v2008_v10 = vld [vmem:[%s2628_s1 + $0x10] sm:$0xff]  }
   0x4   :  { %v2001_v3 = vld [vmem:[%s2628_s1 + $0x80] sm:$0xff]   ;;  %1679 = vmatpush3.bf16.msra.mxu0 %v2000_v2  ;;  %v2005_v7 = vld [vmem:[%s2628_s1 + $0x88] sm:$0xff]   ;;  %v2009_v11 = vld [vmem:[%s2628_s1 + $0x90] sm:$0xff]  }
   0x5   :  { %1743 = vmatpush3.bf16.msra.mxu1 %v2001_v3  ;;  %1680 = vmatprep.subr.bf16.mxu0 %v2002_v4  ;;  %v2010_v12 = vld [vmem:[%s2628_s1 + $0x58] sm:$0xff]   ;;  %v2014_v16 = vld [vmem:[%s2628_s1 + $0x60] sm:$0xff]   ;;  %v2018_v20 = vld [vmem:[%s2628_s1 + $0x68] sm:$0xff]  }
   0x6   :  { %1744 = vmatprep.subr.bf16.mxu1 %v2003_v5  ;;  %v2011_v13 = vld [vmem:[%s2628_s1 + $0xd8] sm:$0xff]   ;;  %v2015_v17 = vld [vmem:[%s2628_s1 + $0xe0] sm:$0xff]   ;;  %v2019_v21 = vld [vmem:[%s2628_s1 + $0xe8] sm:$0xff]  }
   0x7   :  { %v2012_v14 = vld [vmem:[%s2628_s1 + $0x18] sm:$0xff]   ;;  %v2016_v18 = vld [vmem:[%s2628_s1 + $0x20] sm:$0xff]   ;;  %v2020_v22 = vld [vmem:[%s2628_s1 + $0x28] sm:$0xff]  }
   0x8   :  { %1681 = vmatpush3.bf16.msra.mxu0 %v2004_v6  ;;  %v2013_v15 = vld [vmem:[%s2628_s1 + $0x98] sm:$0xff]   ;;  %v2017_v19 = vld [vmem:[%s2628_s1 + $0xa0] sm:$0xff]   ;;  %v2021_v23 = vld [vmem:[%s2628_s1 + $0xa8] sm:$0xff]  }
   0x9   :  { %1745 = vmatpush3.bf16.msra.mxu1 %v2005_v7  ;;  %1682 = vmatprep.subr.bf16.mxu0 %v2006_v8  ;;  %v2022_v24 = vld [vmem:[%s2628_s1 + $0x70] sm:$0xff]   ;;  %v2026_v28 = vld [vmem:[%s2628_s1 + $0x78] sm:$0xff]   ;;  %v21_v32 = vld [vmem:[%s2629_s0] sm:$0xff] }
   0xa   :  { %1746 = vmatprep.subr.bf16.mxu1 %v2007_v9  ;;  %v2023_v25 = vld [vmem:[%s2628_s1 + $0xf0] sm:$0xff]   ;;  %v2027_v29 = vld [vmem:[%s2628_s1 + $0xf8] sm:$0xff]   ;;  %v25_v33 = vld [vmem:[%s2629_s0 + $0x20] sm:$0xff] }
   0xb   :  { %v2024_v26 = vld [vmem:[%s2628_s1 + $0x30] sm:$0xff]   ;;  %v2028_v30 = vld [vmem:[%s2628_s1 + $0x38] sm:$0xff]   ;;  %v22_v34 = vld [vmem:[%s2629_s0 + $0x8] sm:$0xff]  ;;  %v1541_v35 = vcombine.low %v21_v32, %v25_v33  ;;  %v1542_v36 = vcombine.high %v21_v32, %v25_v33 }
   0xc   :  { %1683 = vmatpush3.bf16.msra.mxu0 %v2008_v10  ;;  %v2025_v27 = vld [vmem:[%s2628_s1 + $0xb0] sm:$0xff]   ;;  %v2029_v31 = vld [vmem:[%s2628_s1 + $0xb8] sm:$0xff]   ;;  %v26_v37 = vld [vmem:[%s2629_s0 + $0x28] sm:$0xff] }
   0xd   :  { %1747 = vmatpush3.bf16.msra.mxu1 %v2009_v11  ;;  %1684 = vmatprep.subr.bf16.mxu0 %v2010_v12  ;;  %v1543_v38 = vcombine.low %v22_v34, %v26_v37  ;;  %v1544_v39 = vcombine.high %v22_v34, %v26_v37  ;;  %v2030_v40 = vld [vmem:[%s2628_s1 + $0x140] sm:$0xff]   ;;  %v30_v47 = vld [vmem:[%s2629_s0 + $0x48] sm:$0xff]  ;;  %v2038_v62 = vld [vmem:[%s2628_s1 + $0x150] sm:$0xff]  }
   0xe   :  { %1748 = vmatprep.subr.bf16.mxu1 %v2011_v13  ;;  %956 = vmatprep.mubr.bf16.mxu0 %v1542_v36  ;;  %v2031_v41 = vld [vmem:[%s2628_s1 + $0x100] sm:$0xff]   ;;  %v34_v48 = vld [vmem:[%s2629_s0 + $0x68] sm:$0xff]  ;;  %v2039_v63 = vld [vmem:[%s2628_s1 + $0x110] sm:$0xff]  }
   0xf   :  { %1053 = vmatprep.mubr.bf16.mxu1 %v1544_v39  ;;  %v2032_v42 = vld [vmem:[%s2628_s1 + $0x1c0] sm:$0xff]   ;;  %v1552_v49 = vcombine.high %v30_v47, %v34_v48  ;;  %v2034_v50 = vld [vmem:[%s2628_s1 + $0x148] sm:$0xff]   ;;  %v1551_v53 = vcombine.low %v30_v47, %v34_v48  ;;  %v2040_v0 = vld [vmem:[%s2628_s1 + $0x1d0] sm:$0xff]  }
  0x10   :  { %1685 = vmatpush3.bf16.msra.mxu0 %v2012_v14  ;;  %v2033_v43 = vld [vmem:[%s2628_s1 + $0x180] sm:$0xff]   ;;  %v2035_v52 = vld [vmem:[%s2628_s1 + $0x108] sm:$0xff]   ;;  %v2041_v1 = vld [vmem:[%s2628_s1 + $0x190] sm:$0xff]  }
  0x11   :  { %1749 = vmatpush3.bf16.msra.mxu1 %v2013_v15  ;;  %1686 = vmatprep.subr.bf16.mxu0 %v2014_v16  ;;  %v29_v44 = vld [vmem:[%s2629_s0 + $0x40] sm:$0xff]  ;;  %v2036_v54 = vld [vmem:[%s2628_s1 + $0x1c8] sm:$0xff]   ;;  %v2042_v10 = vld [vmem:[%s2628_s1 + $0x158] sm:$0xff]  }
  0x12   :  { %1750 = vmatprep.subr.bf16.mxu1 %v2015_v17  ;;  %v33_v45 = vld [vmem:[%s2629_s0 + $0x60] sm:$0xff]  ;;  %v2037_v55 = vld [vmem:[%s2628_s1 + $0x188] sm:$0xff]   ;;  %v2043_v11 = vld [vmem:[%s2628_s1 + $0x118] sm:$0xff]  }
  0x13   :  { %v1550_v46 = vcombine.high %v29_v44, %v33_v45  ;;  %v1549_v51 = vcombine.low %v29_v44, %v33_v45  ;;  %v37_v56 = vld [vmem:[%s2629_s0 + $0x80] sm:$0xff]  ;;  %v38_v58 = vld [vmem:[%s2629_s0 + $0x88] sm:$0xff]  ;;  %v2044_v12 = vld [vmem:[%s2628_s1 + $0x1d8] sm:$0xff]  }
  0x14   :  { %1687 = vmatpush3.bf16.msra.mxu0 %v2016_v18  ;;  %v41_v57 = vld [vmem:[%s2629_s0 + $0xa0] sm:$0xff]  ;;  %v42_v59 = vld [vmem:[%s2629_s0 + $0xa8] sm:$0xff]  ;;  %v2045_v13 = vld [vmem:[%s2628_s1 + $0x198] sm:$0xff]  }
  0x15   :  { %1751 = vmatpush3.bf16.msra.mxu1 %v2017_v19  ;;  %1688 = vmatprep.subr.bf16.mxu0 %v2018_v20  ;;  %v1558_v60 = vcombine.high %v37_v56, %v41_v57  ;;  %v1560_v61 = vcombine.high %v38_v58, %v42_v59  ;;  %v1557_v2 = vcombine.low %v37_v56, %v41_v57  ;;  %v45_v3 = vld [vmem:[%s2629_s0 + $0xc0] sm:$0xff]  ;;  %v46_v5 = vld [vmem:[%s2629_s0 + $0xc8] sm:$0xff]  ;;  %v2055_v39 = vld [vmem:[%s2628_s1 + $0x130] sm:$0xff]  }
  0x16   :  { %1752 = vmatprep.subr.bf16.mxu1 %v2019_v21  ;;  %v49_v4 = vld [vmem:[%s2629_s0 + $0xe0] sm:$0xff]  ;;  %v1559_v6 = vcombine.low %v38_v58, %v42_v59  ;;  %v50_v8 = vld [vmem:[%s2629_s0 + $0xe8] sm:$0xff]  ;;  %v2059_v48 = vld [vmem:[%s2628_s1 + $0x138] sm:$0xff]  }
  0x17   :  { %v1566_v7 = vcombine.high %v45_v3, %v49_v4  ;;  %v1568_v9 = vcombine.high %v46_v5, %v50_v8  ;;  %v53_v14 = vld [vmem:[%s2629_s0 + $0x100] sm:$0xff]  ;;  %v54_v16 = vld [vmem:[%s2629_s0 + $0x108] sm:$0xff]  ;;  %v1565_v19 = vcombine.low %v45_v3, %v49_v4  ;;  %v1567_v21 = vcombine.low %v46_v5, %v50_v8  ;;  %v32_v8 = vld [vmem:[%s2629_s0 + $0x58] sm:$0xff] }
  0x18   :  { %1689 = vmatpush3.bf16.msra.mxu0 %v2020_v22  ;;  %v57_v15 = vld [vmem:[%s2629_s0 + $0x120] sm:$0xff]  ;;  %v58_v17 = vld [vmem:[%s2629_s0 + $0x128] sm:$0xff] }
  0x19   :  { %1753 = vmatpush3.bf16.msra.mxu1 %v2021_v23  ;;  %1690 = vmatprep.subr.bf16.mxu0 %v2022_v24  ;;  %v2046_v18 = vld [vmem:[%s2628_s1 + $0x160] sm:$0xff]   ;;  %v1574_v22 = vcombine.high %v53_v14, %v57_v15  ;;  %v1576_v24 = vcombine.high %v54_v16, %v58_v17  ;;  %v2052_v32 = vld [vmem:[%s2628_s1 + $0x1e8] sm:$0xff]   ;;  %v1573_v34 = vcombine.low %v53_v14, %v57_v15  ;;  %v39_v14 = vld [vmem:[%s2629_s0 + $0x90] sm:$0xff] }
  0x1a   :  { %1754 = vmatprep.subr.bf16.mxu1 %v2023_v25  ;;  %v2047_v20 = vld [vmem:[%s2628_s1 + $0x120] sm:$0xff]   ;;  %v2053_v33 = vld [vmem:[%s2628_s1 + $0x1a8] sm:$0xff]   ;;  %v43_v15 = vld [vmem:[%s2629_s0 + $0xb0] sm:$0xff] }
  0x1b   :  { %v2048_v23 = vld [vmem:[%s2628_s1 + $0x1e0] sm:$0xff]   ;;  %v70_v44 = vld [vmem:[%s2629_s0 + $0x188] sm:$0xff] }
  0x1c   :  { %1691 = vmatpush3.bf16.msra.mxu0 %v2024_v26  ;;  %v2049_v25 = vld [vmem:[%s2628_s1 + $0x1a0] sm:$0xff]   ;;  %v74_v45 = vld [vmem:[%s2629_s0 + $0x1a8] sm:$0xff] }
  0x1d   :  { %1755 = vmatpush3.bf16.msra.mxu1 %v2025_v27  ;;  %1692 = vmatprep.subr.bf16.mxu0 %v2026_v28  ;;  %v61_v26 = vld [vmem:[%s2629_s0 + $0x140] sm:$0xff]  ;;  %v2050_v28 = vld [vmem:[%s2628_s1 + $0x168] sm:$0xff]   ;;  %v1591_v59 = vcombine.low %v70_v44, %v74_v45 }
  0x1e   :  { %1756 = vmatprep.subr.bf16.mxu1 %v2027_v29  ;;  %v65_v27 = vld [vmem:[%s2629_s0 + $0x160] sm:$0xff]  ;;  %v62_v29 = vld [vmem:[%s2629_s0 + $0x148] sm:$0xff] }
  0x1f   :  { %v1582_v36 = vcombine.high %v61_v26, %v65_v27  ;;  %v1581_v47 = vcombine.low %v61_v26, %v65_v27  ;;  %v78_v56 = vld [vmem:[%s2629_s0 + $0x1c8] sm:$0xff]  ;;  %v1561_v26 = vcombine.low %v39_v14, %v43_v15 }
  0x20   :  { %1693 = vmatpush3.bf16.msra.mxu0 %v2028_v30  ;;  %v66_v30 = vld [vmem:[%s2629_s0 + $0x168] sm:$0xff] }
  0x21   :  { %1757 = vmatpush3.bf16.msra.mxu1 %v2029_v31  ;;  %1806 = vmatprep.subr.bf16.mxu0 %v2030_v40  ;;  %v2051_v31 = vld [vmem:[%s2628_s1 + $0x128] sm:$0xff]   ;;  %v1584_v37 = vcombine.high %v62_v29, %v66_v30  ;;  %v2056_v40 = vld [vmem:[%s2628_s1 + $0x1f0] sm:$0xff]  }
  0x22   :  { %1870 = vmatprep.subr.bf16.mxu1 %v2032_v42  ;;  %v73_v42 = vld [vmem:[%s2629_s0 + $0x1a0] sm:$0xff]  ;;  %v82_v57 = vld [vmem:[%s2629_s0 + $0x1e8] sm:$0xff] }
  0x23   :  { %957 = vmatmul.mubr.bf16.vlgmr.msra.gmra.mrb[0].mxu0 %v1541_v35  ;;  %v1575_v35 = vcombine.low %v54_v16, %v58_v17  ;;  %v1599_v3 = vcombine.low %v78_v56, %v82_v57  ;;  %v40_v16 = vld [vmem:[%s2629_s0 + $0x98] sm:$0xff] }
  0x24   :  { %1054 = vmatmul.mubr.bf16.vlgmr.msra.gmra.mrb[0].mxu1 %v1543_v38  ;;  %1807 = vmatpush3.bf16.msra.mxu0 %v2031_v41  ;;  %v2054_v38 = vld [vmem:[%s2628_s1 + $0x170] sm:$0xff]   ;;  %v69_v41 = vld [vmem:[%s2629_s0 + $0x180] sm:$0xff]  ;;  %v44_v17 = vld [vmem:[%s2629_s0 + $0xb8] sm:$0xff] }
  0x25   :  { %1871 = vmatpush3.bf16.msra.mxu1 %v2033_v43  ;;  %964 = vmatprep.mubr.bf16.mxu0 %v1550_v46  ;;  %v2057_v43 = vld [vmem:[%s2628_s1 + $0x1b0] sm:$0xff]   ;;  %v2058_v46 = vld [vmem:[%s2628_s1 + $0x178] sm:$0xff]   ;;  %v1589_v58 = vcombine.low %v69_v41, %v73_v42  ;;  %v1563_v27 = vcombine.low %v40_v16, %v44_v17 }
  0x26   :  { %1061 = vmatprep.mubr.bf16.mxu1 %v1552_v49  ;;  %1808 = vmatprep.subr.bf16.mxu0 %v2034_v50  ;;  %v1583_v49 = vcombine.low %v62_v29, %v66_v30  ;;  %v1590_v50 = vcombine.high %v69_v41, %v73_v42  ;;  %v55_v30 = vld [vmem:[%s2629_s0 + $0x110] sm:$0xff]  ;;  %v68_v41 = vld [vmem:[%s2629_s0 + $0x178] sm:$0xff] }
  0x27   :  { %1872 = vmatprep.subr.bf16.mxu1 %v2036_v54  ;;  %v77_v54 = vld [vmem:[%s2629_s0 + $0x1c0] sm:$0xff] }
  0x28   :  { %1809 = vmatpush3.bf16.msra.mxu0 %v2035_v52  ;;  %v1592_v52 = vcombine.high %v70_v44, %v74_v45 }
  0x29   :  { %1873 = vmatpush3.bf16.msra.mxu1 %v2037_v55  ;;  %1810 = vmatprep.subr.bf16.mxu0 %v2038_v62  ;;  %v81_v55 = vld [vmem:[%s2629_s0 + $0x1e0] sm:$0xff]  ;;  %v23_v62 = vld [vmem:[%s2629_s0 + $0x10] sm:$0xff] }
  0x2a   :  { %1874 = vmatprep.subr.bf16.mxu1 %v2040_v0  ;;  %v24_v0 = vld [vmem:[%s2629_s0 + $0x18] sm:$0xff] }
  0x2b   :  { %965 = vmatmul.mubr.bf16.gmra.mrb[4].mxu0 %v1549_v51  ;;  %v2060_v51 = vld [vmem:[%s2628_s1 + $0x1f8] sm:$0xff]  }
  0x2c   :  { %1062 = vmatmul.mubr.bf16.gmra.mrb[4].mxu1 %v1551_v53  ;;  %972 = vmatprep.mubr.bf16.mxu0 %v1558_v60  ;;  %v2061_v53 = vld [vmem:[%s2628_s1 + $0x1b8] sm:$0xff]   ;;  %v1598_v60 = vcombine.high %v77_v54, %v81_v55 }
  0x2d   :  { %1069 = vmatprep.mubr.bf16.mxu1 %v1560_v61  ;;  %1811 = vmatpush3.bf16.msra.mxu0 %v2039_v63  ;;  %v1600_v61 = vcombine.high %v78_v56, %v82_v57  ;;  %v27_v63 = vld [vmem:[%s2629_s0 + $0x30] sm:$0xff]  ;;  %v80_v56 = vld [vmem:[%s2629_s0 + $0x1d8] sm:$0xff] }
  0x2e   :  { %1875 = vmatpush3.bf16.msra.mxu1 %v2041_v1  ;;  %1812 = vmatprep.subr.bf16.mxu0 %v2042_v10  ;;  %v28_v1 = vld [vmem:[%s2629_s0 + $0x38] sm:$0xff]  ;;  %v1546_v4 = vcombine.high %v23_v62, %v27_v63  ;;  %v1545_v10 = vcombine.low %v23_v62, %v27_v63 }
  0x2f   :  { %1876 = vmatprep.subr.bf16.mxu1 %v2044_v12  ;;  %v1548_v5 = vcombine.high %v24_v0, %v28_v1  ;;  %v84_v57 = vld [vmem:[%s2629_s0 + $0x1f8] sm:$0xff] }
  0x30   :  { %v1603_v63 = vcombine.low %v80_v56, %v84_v57 }
  0x31   :  { %1813 = vmatpush3.bf16.msra.mxu0 %v2043_v11  ;;  %v1547_v11 = vcombine.low %v24_v0, %v28_v1  ;;  %v2062_v0 = vld [vmem:[%s2630_s3] sm:$0xff]   ;;  %v2063_v1 = vld [vmem:[%s2630_s3 + $0x8] sm:$0xff]  }
  0x32   :  { %1877 = vmatpush3.bf16.msra.mxu1 %v2045_v13  ;;  %1814 = vmatprep.subr.bf16.mxu0 %v2046_v18 }
  0x33   :  { %973 = vmatmul.mubr.bf16.gmra.mrb[8].mxu0 %v1557_v2  ;;  %1878 = vmatprep.subr.bf16.mxu1 %v2048_v23  ;;  %v1597_v2 = vcombine.low %v77_v54, %v81_v55  ;;  %v51_v23 = vld [vmem:[%s2629_s0 + $0xf0] sm:$0xff] }
  0x34   :  { %1070 = vmatmul.mubr.bf16.gmra.mrb[8].mxu1 %v1559_v6  ;;  %980 = vmatprep.mubr.bf16.mxu0 %v1566_v7  ;;  %v31_v6 = vld [vmem:[%s2629_s0 + $0x50] sm:$0xff] }
  0x35   :  { %1077 = vmatprep.mubr.bf16.mxu1 %v1568_v9  ;;  %1815 = vmatpush3.bf16.msra.mxu0 %v2047_v20  ;;  %v35_v7 = vld [vmem:[%s2629_s0 + $0x70] sm:$0xff]  ;;  %v36_v9 = vld [vmem:[%s2629_s0 + $0x78] sm:$0xff]  ;;  %v1562_v20 = vcombine.high %v39_v14, %v43_v15 }
  0x36   :  { %1879 = vmatpush3.bf16.msra.mxu1 %v2049_v25  ;;  %1816 = vmatprep.subr.bf16.mxu0 %v2050_v28  ;;  %v1554_v12 = vcombine.high %v31_v6, %v35_v7  ;;  %v1556_v13 = vcombine.high %v32_v8, %v36_v9  ;;  %v1553_v18 = vcombine.low %v31_v6, %v35_v7  ;;  %v52_v25 = vld [vmem:[%s2629_s0 + $0xf8] sm:$0xff]  ;;  %v79_v54 = vld [vmem:[%s2629_s0 + $0x1d0] sm:$0xff] }
  0x37   :  { %1880 = vmatprep.subr.bf16.mxu1 %v2052_v32  ;;  %v56_v32 = vld [vmem:[%s2629_s0 + $0x118] sm:$0xff]  ;;  %v83_v55 = vld [vmem:[%s2629_s0 + $0x1f0] sm:$0xff] }
  0x38   :  { %v1601_v62 = vcombine.low %v79_v54, %v83_v55  ;;  %v2068_v6 = vld [vmem:[%s2630_s3 + $0x30] sm:$0xff]   ;;  %v2069_v7 = vld [vmem:[%s2630_s3 + $0x38] sm:$0xff]  }
  0x39   :  { %1817 = vmatpush3.bf16.msra.mxu0 %v2051_v31  ;;  %v59_v31 = vld [vmem:[%s2629_s0 + $0x130] sm:$0xff] }
  0x3a   :  { %1881 = vmatpush3.bf16.msra.mxu1 %v2053_v33  ;;  %1818 = vmatprep.subr.bf16.mxu0 %v2054_v38  ;;  %v60_v33 = vld [vmem:[%s2629_s0 + $0x138] sm:$0xff]  ;;  %v63_v38 = vld [vmem:[%s2629_s0 + $0x150] sm:$0xff]  ;;  %v1577_v42 = vcombine.low %v55_v30, %v59_v31 }
  0x3b   :  { %981 = vmatmul.mubr.bf16.gmra.mrb[12].mxu0 %v1565_v19  ;;  %1882 = vmatprep.subr.bf16.mxu1 %v2056_v40  ;;  %v1555_v19 = vcombine.low %v32_v8, %v36_v9  ;;  %v64_v40 = vld [vmem:[%s2629_s0 + $0x158] sm:$0xff] }
  0x3c   :  { %1078 = vmatmul.mubr.bf16.gmra.mrb[12].mxu1 %v1567_v21  ;;  %988 = vmatprep.mubr.bf16.mxu0 %v1574_v22  ;;  %v1564_v21 = vcombine.high %v40_v16, %v44_v17  ;;  %v47_v22 = vld [vmem:[%s2629_s0 + $0xd0] sm:$0xff]  ;;  %v1588_v45 = vcombine.high %v64_v40, %v68_v41 }
  0x3d   :  { %1085 = vmatprep.mubr.bf16.mxu1 %v1576_v24  ;;  %1819 = vmatpush3.bf16.msra.mxu0 %v2055_v39  ;;  %v48_v24 = vld [vmem:[%s2629_s0 + $0xd8] sm:$0xff]  ;;  %v1570_v28 = vcombine.high %v47_v22, %v51_v23  ;;  %v67_v39 = vld [vmem:[%s2629_s0 + $0x170] sm:$0xff] }
  0x3e   :  { %1883 = vmatpush3.bf16.msra.mxu1 %v2057_v43  ;;  %1820 = vmatprep.subr.bf16.mxu0 %v2058_v46  ;;  %v1572_v29 = vcombine.high %v48_v24, %v52_v25  ;;  %v1579_v43 = vcombine.low %v56_v32, %v60_v33  ;;  %v1586_v44 = vcombine.high %v63_v38, %v67_v39  ;;  %v71_v46 = vld [vmem:[%s2629_s0 + $0x190] sm:$0xff] }
  0x3f   :  { %1884 = vmatprep.subr.bf16.mxu1 %v2060_v51  ;;  %v1587_v51 = vcombine.low %v64_v40, %v68_v41 }
  0x41   :  { %1821 = vmatpush3.bf16.msra.mxu0 %v2059_v48  ;;  %v72_v48 = vld [vmem:[%s2629_s0 + $0x198] sm:$0xff] }
  0x42   :  { %1885 = vmatpush3.bf16.msra.mxu1 %v2061_v53  ;;  %1950 = vmatprep.subr.bf16.mxu0 %v2062_v0 }
  0x43   :  { %989 = vmatmul.mubr.bf16.gmra.mrb[16].mxu0 %v1573_v34  ;;  %v1569_v34 = vcombine.low %v47_v22, %v51_v23  ;;  %1982 = vmatprep.subr.bf16.mxu1 %v2062_v0 }
  0x44   :  { %1086 = vmatmul.mubr.bf16.gmra.mrb[16].mxu1 %v1575_v35  ;;  %996 = vmatprep.mubr.bf16.mxu0 %v1582_v36  ;;  %v1571_v35 = vcombine.low %v48_v24, %v52_v25  ;;  %v1578_v36 = vcombine.high %v55_v30, %v59_v31 }
  0x45   :  { %1093 = vmatprep.mubr.bf16.mxu1 %v1584_v37  ;;  %v1580_v37 = vcombine.high %v56_v32, %v60_v33 }
  0x4b   :  { %997 = vmatmul.mubr.bf16.gmra.mrb[20].mxu0 %v1581_v47  ;;  %v75_v47 = vld [vmem:[%s2629_s0 + $0x1b0] sm:$0xff] }
  0x4c   :  { %1094 = vmatmul.mubr.bf16.gmra.mrb[20].mxu1 %v1583_v49  ;;  %1004 = vmatprep.mubr.bf16.mxu0 %v1590_v50  ;;  %v76_v49 = vld [vmem:[%s2629_s0 + $0x1b8] sm:$0xff]  ;;  %v1585_v50 = vcombine.low %v63_v38, %v67_v39 }
  0x4d   :  { %1101 = vmatprep.mubr.bf16.mxu1 %v1592_v52  ;;  %v1594_v52 = vcombine.high %v71_v46, %v75_v47  ;;  %v1596_v53 = vcombine.high %v72_v48, %v76_v49 }
  0x53   :  { %1005 = vmatmul.mubr.bf16.gmra.mrb[24].mxu0 %v1589_v58  ;;  %v1593_v58 = vcombine.low %v71_v46, %v75_v47 }
  0x54   :  { %1102 = vmatmul.mubr.bf16.gmra.mrb[24].mxu1 %v1591_v59  ;;  %1012 = vmatprep.mubr.bf16.mxu0 %v1598_v60  ;;  %v1595_v59 = vcombine.low %v72_v48, %v76_v49  ;;  %v1602_v60 = vcombine.high %v79_v54, %v83_v55 }
  0x55   :  { %1109 = vmatprep.mubr.bf16.mxu1 %v1600_v61  ;;  %v1604_v61 = vcombine.high %v80_v56, %v84_v57 }
  0x5b   :  { %1013 = vmatmul.mubr.bf16.gmra.mrb[28].mxu0 %v1597_v2  ;;  %v2064_v2 = vld [vmem:[%s2630_s3 + $0x10] sm:$0xff]  }
  0x5c   :  { %1110 = vmatmul.mubr.bf16.gmra.mrb[28].mxu1 %v1599_v3  ;;  %1150 = vmatprep.mubr.bf16.mxu0 %v1546_v4  ;;  %v2065_v3 = vld [vmem:[%s2630_s3 + $0x18] sm:$0xff]   ;;  %v2066_v4 = vld [vmem:[%s2630_s3 + $0x20] sm:$0xff]  }
  0x5d   :  { %1247 = vmatprep.mubr.bf16.mxu1 %v1548_v5  ;;  %v2067_v5 = vld [vmem:[%s2630_s3 + $0x28] sm:$0xff]  }
  0x63   :  { %1151 = vmatmul.mubr.bf16.vlgmr.msra.gmra.mrb[32].mxu0 %v1545_v10  ;;  %v2511_v10 = vld [vmem:[%s2631_s2] ss:$0 sm:$0xff] }
  0x64   :  { %1248 = vmatmul.mubr.bf16.vlgmr.msra.gmra.mrb[32].mxu1 %v1547_v11  ;;  %1158 = vmatprep.mubr.bf16.mxu0 %v1554_v12 }
  0x65   :  { %1255 = vmatprep.mubr.bf16.mxu1 %v1556_v13  ;;  %1951 = vmatpush3.bf16.msra.mxu0 %v2062_v0 }
  0x66   :  { %1990 = vmatpush3.bf16.msra.mxu1 %v2062_v0  ;;  %1952 = vmatprep.subr.bf16.mxu0 %v2063_v1 }
  0x67   :  { %1983 = vmatprep.subr.bf16.mxu1 %v2063_v1 }
  0x69   :  { %1953 = vmatpush3.bf16.msra.mxu0 %v2063_v1 }
  0x6a   :  { %1991 = vmatpush3.bf16.msra.mxu1 %v2063_v1  ;;  %1954 = vmatprep.subr.bf16.mxu0 %v2064_v2 }
  0x6b   :  { %1159 = vmatmul.mubr.bf16.gmra.mrb[36].mxu0 %v1553_v18  ;;  %1984 = vmatprep.subr.bf16.mxu1 %v2064_v2 }
  0x6c   :  { %1256 = vmatmul.mubr.bf16.gmra.mrb[36].mxu1 %v1555_v19  ;;  %1166 = vmatprep.mubr.bf16.mxu0 %v1562_v20 }
  0x6d   :  { %1263 = vmatprep.mubr.bf16.mxu1 %v1564_v21  ;;  %1955 = vmatpush3.bf16.msra.mxu0 %v2064_v2 }
  0x6e   :  { %1992 = vmatpush3.bf16.msra.mxu1 %v2064_v2  ;;  %1956 = vmatprep.subr.bf16.mxu0 %v2065_v3 }
  0x6f   :  { %1985 = vmatprep.subr.bf16.mxu1 %v2065_v3 }
  0x71   :  { %1957 = vmatpush3.bf16.msra.mxu0 %v2065_v3 }
  0x72   :  { %1993 = vmatpush3.bf16.msra.mxu1 %v2065_v3  ;;  %1958 = vmatprep.subr.bf16.mxu0 %v2066_v4 }
  0x73   :  { %1167 = vmatmul.mubr.bf16.gmra.mrb[40].mxu0 %v1561_v26  ;;  %1986 = vmatprep.subr.bf16.mxu1 %v2066_v4 }
  0x74   :  { %1264 = vmatmul.mubr.bf16.gmra.mrb[40].mxu1 %v1563_v27  ;;  %1174 = vmatprep.mubr.bf16.mxu0 %v1570_v28 }
  0x75   :  { %1271 = vmatprep.mubr.bf16.mxu1 %v1572_v29  ;;  %1959 = vmatpush3.bf16.msra.mxu0 %v2066_v4 }
  0x76   :  { %1994 = vmatpush3.bf16.msra.mxu1 %v2066_v4  ;;  %1960 = vmatprep.subr.bf16.mxu0 %v2067_v5 }
  0x77   :  { %1987 = vmatprep.subr.bf16.mxu1 %v2067_v5 }
  0x79   :  { %1961 = vmatpush3.bf16.msra.mxu0 %v2067_v5 }
  0x7a   :  { %1995 = vmatpush3.bf16.msra.mxu1 %v2067_v5  ;;  %1962 = vmatprep.subr.bf16.mxu0 %v2068_v6 }
  0x7b   :  { %1175 = vmatmul.mubr.bf16.gmra.mrb[44].mxu0 %v1569_v34  ;;  %1988 = vmatprep.subr.bf16.mxu1 %v2068_v6 }
  0x7c   :  { %1272 = vmatmul.mubr.bf16.gmra.mrb[44].mxu1 %v1571_v35  ;;  %1182 = vmatprep.mubr.bf16.mxu0 %v1578_v36 }
  0x7d   :  { %1279 = vmatprep.mubr.bf16.mxu1 %v1580_v37  ;;  %1963 = vmatpush3.bf16.msra.mxu0 %v2068_v6 }
  0x7e   :  { %1996 = vmatpush3.bf16.msra.mxu1 %v2068_v6  ;;  %1964 = vmatprep.subr.bf16.mxu0 %v2069_v7 }
  0x7f   :  { %1989 = vmatprep.subr.bf16.mxu1 %v2069_v7 }
  0x81   :  { %1965 = vmatpush3.bf16.msra.mxu0 %v2069_v7 }
  0x82   :  { %1997 = vmatpush3.bf16.msra.mxu1 %v2069_v7 }
  0x83   :  { %1183 = vmatmul.mubr.bf16.gmra.mrb[48].mxu0 %v1577_v42 }
  0x84   :  { %1280 = vmatmul.mubr.bf16.gmra.mrb[48].mxu1 %v1579_v43  ;;  %1190 = vmatprep.mubr.bf16.mxu0 %v1586_v44 }
  0x85   :  { %1287 = vmatprep.mubr.bf16.mxu1 %v1588_v45 }
  0x8b   :  { %1191 = vmatmul.mubr.bf16.gmra.mrb[52].mxu0 %v1585_v50 }
  0x8c   :  { %1288 = vmatmul.mubr.bf16.gmra.mrb[52].mxu1 %v1587_v51  ;;  %1198 = vmatprep.mubr.bf16.mxu0 %v1594_v52 }
  0x8d   :  { %1295 = vmatprep.mubr.bf16.mxu1 %v1596_v53 }
  0x93   :  { %1199 = vmatmul.mubr.bf16.gmra.mrb[56].mxu0 %v1593_v58 }
  0x94   :  { %1296 = vmatmul.mubr.bf16.gmra.mrb[56].mxu1 %v1595_v59  ;;  %1206 = vmatprep.mubr.bf16.mxu0 %v1602_v60 }
  0x95   :  { %1303 = vmatprep.mubr.bf16.mxu1 %v1604_v61 }
  0x9b   :  { %1207 = vmatmul.mubr.bf16.gmra.mrb[60].mxu0 %v1601_v62 }
  0x9c   :  { %1304 = vmatmul.mubr.bf16.gmra.mrb[60].mxu1 %v1603_v63 }
  0xf6   :  { %v1694_v8 = vpop.f32.mrb[0].mxu0 }
  0xf7   :  { %v1758_v9 = vpop.f32.mrb[0].mxu1  ;;  %v1695_v11 = vpop.f32.mrb[1].mxu0 }
  0xf8   :  { %v1696_v12 = vadd.f32 %v1695_v11, %v1694_v8  ;;  %v1759_v13 = vpop.f32.mrb[1].mxu1  ;;  %v1697_v14 = vpop.f32.mrb[2].mxu0 }
  0xf9   :  { %v1760_v15 = vadd.f32 %v1759_v13, %v1758_v9  ;;  %v1761_v16 = vpop.f32.mrb[2].mxu1  ;;  %v1698_v17 = vpop.f32.mrb[3].mxu0 }
  0xfa   :  { %v959_v18 = vadd.f32 %v1696_v12, %v2511_v10  ;;  %v1699_v19 = vadd.f32 %v1698_v17, %v1697_v14  ;;  %v1762_v20 = vpop.f32.mrb[3].mxu1 }
  0xfb   :  { %v1763_v21 = vadd.f32 %v1762_v20, %v1761_v16 }
  0xfc   :  { %v2514_v22 = vadd.f32 %v1760_v15, %v959_v18  ;;  %v962_v23 = vadd.f32 %v1699_v19, %v2511_v10 }
  0xfe   :  { %v2517_v24 = vadd.f32 %v1763_v21, %v962_v23  ;;  %v1700_v25 = vpop.f32.mrb[4].mxu0 }
  0xff   :  { %v1764_v26 = vpop.f32.mrb[4].mxu1  ;;  %v1701_v27 = vpop.f32.mrb[5].mxu0 }
 0x100   :  { %v1702_v28 = vadd.f32 %v1701_v27, %v1700_v25  ;;  %v1765_v29 = vpop.f32.mrb[5].mxu1  ;;  %v1703_v30 = vpop.f32.mrb[6].mxu0 }
 0x101   :  { %v1766_v31 = vadd.f32 %v1765_v29, %v1764_v26  ;;  %v1767_v32 = vpop.f32.mrb[6].mxu1  ;;  %v1704_v33 = vpop.f32.mrb[7].mxu0 }
 0x102   :  { %v967_v34 = vadd.f32 %v1702_v28, %v2511_v10  ;;  %v1705_v35 = vadd.f32 %v1704_v33, %v1703_v30  ;;  %v1768_v36 = vpop.f32.mrb[7].mxu1 }
 0x103   :  { %v1769_v37 = vadd.f32 %v1768_v36, %v1767_v32 }
 0x104   :  { %v2520_v38 = vadd.f32 %v1766_v31, %v967_v34  ;;  %v970_v39 = vadd.f32 %v1705_v35, %v2511_v10 }
 0x106   :  { %v2523_v40 = vadd.f32 %v1769_v37, %v970_v39  ;;  %v1706_v41 = vpop.f32.mrb[8].mxu0 }
 0x107   :  { %v1770_v42 = vpop.f32.mrb[8].mxu1  ;;  %v1707_v43 = vpop.f32.mrb[9].mxu0 }
 0x108   :  { %v1708_v44 = vadd.f32 %v1707_v43, %v1706_v41  ;;  %v1771_v45 = vpop.f32.mrb[9].mxu1  ;;  %v1709_v46 = vpop.f32.mrb[10].mxu0 }
 0x109   :  { %v1772_v47 = vadd.f32 %v1771_v45, %v1770_v42  ;;  %v1773_v48 = vpop.f32.mrb[10].mxu1  ;;  %v1710_v49 = vpop.f32.mrb[11].mxu0 }
 0x10a   :  { %v975_v50 = vadd.f32 %v1708_v44, %v2511_v10  ;;  %v1711_v51 = vadd.f32 %v1710_v49, %v1709_v46  ;;  %v1774_v52 = vpop.f32.mrb[11].mxu1 }
 0x10b   :  { %v1775_v53 = vadd.f32 %v1774_v52, %v1773_v48 }
 0x10c   :  { %v2526_v54 = vadd.f32 %v1772_v47, %v975_v50  ;;  %v978_v55 = vadd.f32 %v1711_v51, %v2511_v10 }
 0x10e   :  { %v2529_v56 = vadd.f32 %v1775_v53, %v978_v55  ;;  %v1712_v57 = vpop.f32.mrb[12].mxu0 }
 0x10f   :  { %v1776_v58 = vpop.f32.mrb[12].mxu1  ;;  %v1713_v59 = vpop.f32.mrb[13].mxu0 }
 0x110   :  { %v1714_v60 = vadd.f32 %v1713_v59, %v1712_v57  ;;  %v1777_v61 = vpop.f32.mrb[13].mxu1  ;;  %v1715_v62 = vpop.f32.mrb[14].mxu0 }
 0x111   :  { %v1778_v63 = vadd.f32 %v1777_v61, %v1776_v58  ;;  %v1779_v0 = vpop.f32.mrb[14].mxu1  ;;  %v1716_v1 = vpop.f32.mrb[15].mxu0 }
 0x112   :  { %v983_v2 = vadd.f32 %v1714_v60, %v2511_v10  ;;  %v1717_v3 = vadd.f32 %v1716_v1, %v1715_v62  ;;  %v1780_v4 = vpop.f32.mrb[15].mxu1 }
 0x113   :  { %v1781_v5 = vadd.f32 %v1780_v4, %v1779_v0 }
 0x114   :  { %v2532_v6 = vadd.f32 %v1778_v63, %v983_v2  ;;  %v986_v7 = vadd.f32 %v1717_v3, %v2511_v10 }
 0x116   :  { %v2535_v8 = vadd.f32 %v1781_v5, %v986_v7  ;;  %v1718_v9 = vpop.f32.mrb[16].mxu0 }
 0x117   :  { %v1782_v11 = vpop.f32.mrb[16].mxu1  ;;  %v1719_v12 = vpop.f32.mrb[17].mxu0 }
 0x118   :  { %v1720_v13 = vadd.f32 %v1719_v12, %v1718_v9  ;;  %v1783_v14 = vpop.f32.mrb[17].mxu1  ;;  %v1721_v15 = vpop.f32.mrb[18].mxu0 }
 0x119   :  { %v1784_v16 = vadd.f32 %v1783_v14, %v1782_v11  ;;  %v1785_v17 = vpop.f32.mrb[18].mxu1  ;;  %v1722_v18 = vpop.f32.mrb[19].mxu0 }
 0x11a   :  { %v991_v19 = vadd.f32 %v1720_v13, %v2511_v10  ;;  %v1723_v20 = vadd.f32 %v1722_v18, %v1721_v15  ;;  %v1786_v21 = vpop.f32.mrb[19].mxu1 }
 0x11b   :  { %v1787_v23 = vadd.f32 %v1786_v21, %v1785_v17 }
 0x11c   :  { %v2538_v25 = vadd.f32 %v1784_v16, %v991_v19  ;;  %v994_v26 = vadd.f32 %v1723_v20, %v2511_v10 }
 0x11e   :  { %v2541_v27 = vadd.f32 %v1787_v23, %v994_v26  ;;  %v1724_v28 = vpop.f32.mrb[20].mxu0 }
 0x11f   :  { %v1788_v29 = vpop.f32.mrb[20].mxu1  ;;  %v1725_v30 = vpop.f32.mrb[21].mxu0 }
 0x120   :  { %v1726_v31 = vadd.f32 %v1725_v30, %v1724_v28  ;;  %v1789_v32 = vpop.f32.mrb[21].mxu1  ;;  %v1727_v33 = vpop.f32.mrb[22].mxu0 }
 0x121   :  { %v1790_v34 = vadd.f32 %v1789_v32, %v1788_v29  ;;  %v1791_v35 = vpop.f32.mrb[22].mxu1  ;;  %v1728_v36 = vpop.f32.mrb[23].mxu0 }
 0x122   :  { %v999_v37 = vadd.f32 %v1726_v31, %v2511_v10  ;;  %v1729_v39 = vadd.f32 %v1728_v36, %v1727_v33  ;;  %v1792_v41 = vpop.f32.mrb[23].mxu1 }
 0x123   :  { %v1793_v42 = vadd.f32 %v1792_v41, %v1791_v35 }
 0x124   :  { %v2544_v43 = vadd.f32 %v1790_v34, %v999_v37  ;;  %v1002_v44 = vadd.f32 %v1729_v39, %v2511_v10 }
 0x126   :  { %v2547_v45 = vadd.f32 %v1793_v42, %v1002_v44  ;;  %v1730_v46 = vpop.f32.mrb[24].mxu0 }
 0x127   :  { %v1794_v47 = vpop.f32.mrb[24].mxu1  ;;  %v1731_v48 = vpop.f32.mrb[25].mxu0 }
 0x128   :  { %v1732_v49 = vadd.f32 %v1731_v48, %v1730_v46  ;;  %v1795_v50 = vpop.f32.mrb[25].mxu1  ;;  %v1733_v51 = vpop.f32.mrb[26].mxu0 }
 0x129   :  { %v1796_v52 = vadd.f32 %v1795_v50, %v1794_v47  ;;  %v1797_v53 = vpop.f32.mrb[26].mxu1  ;;  %v1734_v55 = vpop.f32.mrb[27].mxu0 }
 0x12a   :  { %v1007_v57 = vadd.f32 %v1732_v49, %v2511_v10  ;;  %v1735_v58 = vadd.f32 %v1734_v55, %v1733_v51  ;;  %v1798_v59 = vpop.f32.mrb[27].mxu1 }
 0x12b   :  { %v1799_v60 = vadd.f32 %v1798_v59, %v1797_v53 }
 0x12c   :  { %v2550_v61 = vadd.f32 %v1796_v52, %v1007_v57  ;;  %v1010_v62 = vadd.f32 %v1735_v58, %v2511_v10 }
 0x12e   :  { %v2553_v63 = vadd.f32 %v1799_v60, %v1010_v62  ;;  %v1736_v0 = vpop.f32.mrb[28].mxu0 }
 0x12f   :  { %v1800_v1 = vpop.f32.mrb[28].mxu1  ;;  %v1737_v2 = vpop.f32.mrb[29].mxu0 }
 0x130   :  { %v1738_v3 = vadd.f32 %v1737_v2, %v1736_v0  ;;  %v1801_v4 = vpop.f32.mrb[29].mxu1  ;;  %v1739_v5 = vpop.f32.mrb[30].mxu0 }
 0x131   :  { %v1802_v7 = vadd.f32 %v1801_v4, %v1800_v1  ;;  %v1803_v9 = vpop.f32.mrb[30].mxu1  ;;  %v1740_v11 = vpop.f32.mrb[31].mxu0 }
 0x132   :  { %v1015_v12 = vadd.f32 %v1738_v3, %v2511_v10  ;;  %v1741_v13 = vadd.f32 %v1740_v11, %v1739_v5  ;;  %v1804_v14 = vpop.f32.mrb[31].mxu1 }
 0x133   :  { %v1805_v15 = vadd.f32 %v1804_v14, %v1803_v9 }
 0x134   :  { %v2556_v16 = vadd.f32 %v1802_v7, %v1015_v12  ;;  %v1018_v17 = vadd.f32 %v1741_v13, %v2511_v10 }
 0x136   :  { %v2559_v18 = vadd.f32 %v1805_v15, %v1018_v17  ;;  %v1822_v19 = vpop.f32.mrb[32].mxu0 }
 0x137   :  { %v1886_v20 = vpop.f32.mrb[32].mxu1  ;;  %v1823_v21 = vpop.f32.mrb[33].mxu0 }
 0x138   :  { %v1824_v23 = vadd.f32 %v1823_v21, %v1822_v19  ;;  %v1887_v26 = vpop.f32.mrb[33].mxu1  ;;  %v1825_v28 = vpop.f32.mrb[34].mxu0 }
 0x139   :  { %v1888_v29 = vadd.f32 %v1887_v26, %v1886_v20  ;;  %v1889_v30 = vpop.f32.mrb[34].mxu1  ;;  %v1826_v31 = vpop.f32.mrb[35].mxu0 }
 0x13a   :  { %v1153_v32 = vadd.f32 %v1824_v23, %v2514_v22  ;;  %v1827_v33 = vadd.f32 %v1826_v31, %v1825_v28  ;;  %v1890_v34 = vpop.f32.mrb[35].mxu1 }
 0x13b   :  { %v1891_v35 = vadd.f32 %v1890_v34, %v1889_v30 }
 0x13c   :  { %v1250_v36 = vadd.f32 %v1888_v29, %v1153_v32  ;;  %v1156_v37 = vadd.f32 %v1827_v33, %v2517_v24 }
 0x13e   :  { %v1253_v10 = vadd.f32 %v1891_v35, %v1156_v37  ;;  %v1828_v39 = vpop.f32.mrb[36].mxu0  ;;  %v1312_v44 = vmax.f32 %v1250_v36, 0.0 }
 0x13f   :  { %v1892_v41 = vpop.f32.mrb[36].mxu1  ;;  %v1829_v42 = vpop.f32.mrb[37].mxu0 }
 0x140   :  { %v1313_v46 = vmax.f32 %v1253_v10, 0.0  ;;  %v1830_v47 = vadd.f32 %v1829_v42, %v1828_v39  ;;  %v1893_v48 = vpop.f32.mrb[37].mxu1  ;;  %v1831_v49 = vpop.f32.mrb[38].mxu0 }
 0x141   :  { %v1894_v50 = vadd.f32 %v1893_v48, %v1892_v41  ;;  %v1895_v51 = vpop.f32.mrb[38].mxu1  ;;  %v1832_v52 = vpop.f32.mrb[39].mxu0 }
 0x142   :  { %v1161_v22 = vadd.f32 %v1830_v47, %v2520_v38  ;;  %v1833_v53 = vadd.f32 %v1832_v52, %v1831_v49  ;;  %v1896_v55 = vpop.f32.mrb[39].mxu1  ;;  %v1328_v57 = vpack.c.bf16 %v1313_v46, %v1312_v44 }
 0x143   :  { %v1897_v58 = vadd.f32 %v1896_v55, %v1895_v51 }
 0x144   :  { %v1258_v59 = vadd.f32 %v1894_v50, %v1161_v22  ;;  %v1164_v24 = vadd.f32 %v1833_v53, %v2523_v40  ;;  %1966 = vmatprep.mubr.bf16.mxu0 %v1328_v57 }
 0x146   :  { %v1261_v60 = vadd.f32 %v1897_v58, %v1164_v24  ;;  %v1834_v62 = vpop.f32.mrb[40].mxu0  ;;  %v1314_v2 = vmax.f32 %v1258_v59, 0.0 }
 0x147   :  { %v1898_v0 = vpop.f32.mrb[40].mxu1  ;;  %v1835_v1 = vpop.f32.mrb[41].mxu0 }
 0x148   :  { %v1315_v3 = vmax.f32 %v1261_v60, 0.0  ;;  %v1836_v4 = vadd.f32 %v1835_v1, %v1834_v62  ;;  %v1899_v5 = vpop.f32.mrb[41].mxu1  ;;  %v1837_v7 = vpop.f32.mrb[42].mxu0 }
 0x149   :  { %v1900_v9 = vadd.f32 %v1899_v5, %v1898_v0  ;;  %v1901_v11 = vpop.f32.mrb[42].mxu1  ;;  %v1838_v38 = vpop.f32.mrb[43].mxu0 }
 0x14a   :  { %v1329_v12 = vpack.c.bf16 %v1315_v3, %v1314_v2  ;;  %v1169_v13 = vadd.f32 %v1836_v4, %v2526_v54  ;;  %v1839_v14 = vadd.f32 %v1838_v38, %v1837_v7  ;;  %v1902_v15 = vpop.f32.mrb[43].mxu1 }
 0x14b   :  { %v1903_v17 = vadd.f32 %v1902_v15, %v1901_v11 }
 0x14c   :  { %v1266_v40 = vadd.f32 %v1900_v9, %v1169_v13  ;;  %v1172_v19 = vadd.f32 %v1839_v14, %v2529_v56  ;;  %1967 = vmatmul.mubr.bf16.vlgmr.msra.gmra.mrb[64].mxu0 %v1329_v12 }
 0x14e   :  { %v1269_v20 = vadd.f32 %v1903_v17, %v1172_v19  ;;  %v1840_v21 = vpop.f32.mrb[44].mxu0  ;;  %v1316_v28 = vmax.f32 %v1266_v40, 0.0 }
 0x14f   :  { %v1904_v23 = vpop.f32.mrb[44].mxu1  ;;  %v1841_v26 = vpop.f32.mrb[45].mxu0 }
 0x150   :  { %v1317_v29 = vmax.f32 %v1269_v20, 0.0  ;;  %v1842_v30 = vadd.f32 %v1841_v26, %v1840_v21  ;;  %v1905_v31 = vpop.f32.mrb[45].mxu1  ;;  %v1843_v32 = vpop.f32.mrb[46].mxu0 }
 0x151   :  { %v1906_v33 = vadd.f32 %v1905_v31, %v1904_v23  ;;  %v1907_v34 = vpop.f32.mrb[46].mxu1  ;;  %v1844_v35 = vpop.f32.mrb[47].mxu0 }
 0x152   :  { %v1177_v54 = vadd.f32 %v1842_v30, %v2532_v6  ;;  %v1845_v36 = vadd.f32 %v1844_v35, %v1843_v32  ;;  %v1908_v37 = vpop.f32.mrb[47].mxu1  ;;  %v1330_v10 = vpack.c.bf16 %v1317_v29, %v1316_v28 }
 0x153   :  { %v1909_v39 = vadd.f32 %v1908_v37, %v1907_v34 }
 0x154   :  { %v1274_v56 = vadd.f32 %v1906_v33, %v1177_v54  ;;  %v1180_v41 = vadd.f32 %v1845_v36, %v2535_v8  ;;  %1970 = vmatprep.mubr.bf16.mxu0 %v1330_v10 }
 0x156   :  { %v1277_v42 = vadd.f32 %v1909_v39, %v1180_v41  ;;  %v1846_v44 = vpop.f32.mrb[48].mxu0  ;;  %v1318_v48 = vmax.f32 %v1274_v56, 0.0 }
 0x157   :  { %v1910_v46 = vpop.f32.mrb[48].mxu1  ;;  %v1847_v47 = vpop.f32.mrb[49].mxu0 }
 0x158   :  { %v1319_v49 = vmax.f32 %v1277_v42, 0.0  ;;  %v1848_v50 = vadd.f32 %v1847_v47, %v1846_v44  ;;  %v1911_v51 = vpop.f32.mrb[49].mxu1  ;;  %v1849_v52 = vpop.f32.mrb[50].mxu0 }
 0x159   :  { %v1912_v22 = vadd.f32 %v1911_v51, %v1910_v46  ;;  %v1913_v53 = vpop.f32.mrb[50].mxu1  ;;  %v1850_v6 = vpop.f32.mrb[51].mxu0 }
 0x15a   :  { %v1185_v55 = vadd.f32 %v1848_v50, %v2538_v25  ;;  %v1851_v57 = vadd.f32 %v1850_v6, %v1849_v52  ;;  %v1914_v58 = vpop.f32.mrb[51].mxu1  ;;  %v1331_v59 = vpack.c.bf16 %v1319_v49, %v1318_v48 }
 0x15b   :  { %v1915_v24 = vadd.f32 %v1914_v58, %v1913_v53 }
 0x15c   :  { %v1282_v8 = vadd.f32 %v1912_v22, %v1185_v55  ;;  %v1188_v60 = vadd.f32 %v1851_v57, %v2541_v27  ;;  %1971 = vmatmul.mubr.bf16.gmra.mrb[68].mxu0 %v1331_v59 }
 0x15e   :  { %v1285_v62 = vadd.f32 %v1915_v24, %v1188_v60  ;;  %v1852_v0 = vpop.f32.mrb[52].mxu0  ;;  %v1320_v3 = vmax.f32 %v1282_v8, 0.0  ;;  %v1669_v60 = vld [vmem:[%s2632_s4] ss:$0 sm:$0xff] }
 0x15f   :  { %v1916_v1 = vpop.f32.mrb[52].mxu1  ;;  %v1853_v2 = vpop.f32.mrb[53].mxu0 }
 0x160   :  { %v1321_v4 = vmax.f32 %v1285_v62, 0.0  ;;  %v1854_v5 = vadd.f32 %v1853_v2, %v1852_v0  ;;  %v1917_v7 = vpop.f32.mrb[53].mxu1  ;;  %v1855_v9 = vpop.f32.mrb[54].mxu0 }
 0x161   :  { %v1918_v11 = vadd.f32 %v1917_v7, %v1916_v1  ;;  %v1919_v38 = vpop.f32.mrb[54].mxu1  ;;  %v1856_v25 = vpop.f32.mrb[55].mxu0 }
 0x162   :  { %v1193_v12 = vadd.f32 %v1854_v5, %v2544_v43  ;;  %v1857_v13 = vadd.f32 %v1856_v25, %v1855_v9  ;;  %v1920_v14 = vpop.f32.mrb[55].mxu1  ;;  %v1332_v15 = vpack.c.bf16 %v1321_v4, %v1320_v3 }
 0x163   :  { %v1921_v17 = vadd.f32 %v1920_v14, %v1919_v38 }
 0x164   :  { %v1290_v27 = vadd.f32 %v1918_v11, %v1193_v12  ;;  %v1196_v40 = vadd.f32 %v1857_v13, %v2547_v45  ;;  %1974 = vmatprep.mubr.bf16.mxu1 %v1332_v15 }
 0x166   :  { %v1293_v19 = vadd.f32 %v1921_v17, %v1196_v40  ;;  %v1858_v20 = vpop.f32.mrb[56].mxu0  ;;  %v1322_v26 = vmax.f32 %v1290_v27, 0.0 }
 0x167   :  { %v1922_v21 = vpop.f32.mrb[56].mxu1  ;;  %v1859_v23 = vpop.f32.mrb[57].mxu0 }
 0x168   :  { %v1323_v28 = vmax.f32 %v1293_v19, 0.0  ;;  %v1860_v29 = vadd.f32 %v1859_v23, %v1858_v20  ;;  %v1923_v30 = vpop.f32.mrb[57].mxu1  ;;  %v1861_v31 = vpop.f32.mrb[58].mxu0 }
 0x169   :  { %v1924_v32 = vadd.f32 %v1923_v30, %v1922_v21  ;;  %v1925_v33 = vpop.f32.mrb[58].mxu1  ;;  %v1862_v43 = vpop.f32.mrb[59].mxu0 }
 0x16a   :  { %v1333_v34 = vpack.c.bf16 %v1323_v28, %v1322_v26  ;;  %v1201_v35 = vadd.f32 %v1860_v29, %v2550_v61  ;;  %v1863_v54 = vadd.f32 %v1862_v43, %v1861_v31  ;;  %v1926_v36 = vpop.f32.mrb[59].mxu1 }
 0x16b   :  { %v1927_v37 = vadd.f32 %v1926_v36, %v1925_v33 }
 0x16c   :  { %v1298_v45 = vadd.f32 %v1924_v32, %v1201_v35  ;;  %v1204_v10 = vadd.f32 %v1863_v54, %v2553_v63  ;;  %1975 = vmatmul.mubr.bf16.vlgmr.msra.gmra.mrb[64].mxu1 %v1333_v34 }
 0x16e   :  { %v1301_v39 = vadd.f32 %v1927_v37, %v1204_v10  ;;  %v1864_v56 = vpop.f32.mrb[60].mxu0  ;;  %v1324_v44 = vmax.f32 %v1298_v45, 0.0 }
 0x16f   :  { %v1928_v41 = vpop.f32.mrb[60].mxu1  ;;  %v1865_v42 = vpop.f32.mrb[61].mxu0 }
 0x170   :  { %v1325_v46 = vmax.f32 %v1301_v39, 0.0  ;;  %v1866_v47 = vadd.f32 %v1865_v42, %v1864_v56  ;;  %v1929_v48 = vpop.f32.mrb[61].mxu1  ;;  %v1867_v49 = vpop.f32.mrb[62].mxu0 }
 0x171   :  { %v1930_v50 = vadd.f32 %v1929_v48, %v1928_v41  ;;  %v1931_v51 = vpop.f32.mrb[62].mxu1  ;;  %v1868_v52 = vpop.f32.mrb[63].mxu0 }
 0x172   :  { %v1209_v61 = vadd.f32 %v1866_v47, %v2556_v16  ;;  %v1869_v22 = vadd.f32 %v1868_v52, %v1867_v49  ;;  %v1932_v53 = vpop.f32.mrb[63].mxu1  ;;  %v1334_v6 = vpack.c.bf16 %v1325_v46, %v1324_v44 }
 0x173   :  { %v1933_v55 = vadd.f32 %v1932_v53, %v1931_v51 }
 0x174   :  { %v1306_v63 = vadd.f32 %v1930_v50, %v1209_v61  ;;  %v1212_v57 = vadd.f32 %v1869_v22, %v2559_v18  ;;  %1978 = vmatprep.mubr.bf16.mxu1 %v1334_v6 }
 0x176   :  { %v1309_v58 = vadd.f32 %v1933_v55, %v1212_v57  ;;  %v1326_v59 = vmax.f32 %v1306_v63, 0.0 }
 0x178   :  { %v1327_v24 = vmax.f32 %v1309_v58, 0.0 }
 0x17a   :  { %v1335_v8 = vpack.c.bf16 %v1327_v24, %v1326_v59 }
 0x17c   :  { %1979 = vmatmul.mubr.bf16.gmra.mrb[68].mxu1 %v1335_v8 }
 0x21f   :  { %v1968_v62 = vpop.f32.mrb[64].mxu0 }
 0x220   :  { %v1450_v0 = vadd.f32 %v1968_v62, %v1669_v60  ;;  %v1441_v16 = vpop.f32.mrb[65].mxu0 }
 0x221   :  { %v1442_v1 = vadd.f32 %v1669_v60, %v1441_v16  ;;  %v1969_v2 = vpop.f32.mrb[66].mxu0 }
 0x222   :  { %v1506_v3 = vmax.f32 %v1450_v0, 0.0  ;;  %v1453_v4 = vadd.f32 %v1969_v2, %v1669_v60  ;;  %v1444_v5 = vpop.f32.mrb[67].mxu0 }
 0x223   :  { %v1504_v7 = vmax.f32 %v1442_v1, 0.0  ;;  %v1445_v18 = vadd.f32 %v1669_v60, %v1444_v5 }
 0x224   :  { %1522 = vst [vmem:[%s2633_s5 + $0x10] sm:$0xff] %v1506_v3  ;;  %v1507_v9 = vmax.f32 %v1453_v4, 0.0 }
 0x225   :  { %1520 = vst [vmem:[%s2633_s5] sm:$0xff] %v1504_v7  ;;  %v1505_v11 = vmax.f32 %v1445_v18, 0.0 }
 0x226   :  { %1523 = vst [vmem:[%s2633_s5 + $0x18] sm:$0xff] %v1507_v9 }
 0x227   :  { %1521 = vst [vmem:[%s2633_s5 + $0x8] sm:$0xff] %v1505_v11 }
 0x22f   :  { %v1972_v38 = vpop.f32.mrb[68].mxu0 }
 0x230   :  { %v1466_v25 = vadd.f32 %v1972_v38, %v1669_v60  ;;  %v1457_v12 = vpop.f32.mrb[69].mxu0 }
 0x231   :  { %v1458_v13 = vadd.f32 %v1669_v60, %v1457_v12  ;;  %v1973_v14 = vpop.f32.mrb[70].mxu0 }
 0x232   :  { %v1510_v15 = vmax.f32 %v1466_v25, 0.0  ;;  %v1469_v17 = vadd.f32 %v1973_v14, %v1669_v60  ;;  %v1460_v27 = vpop.f32.mrb[71].mxu0 }
 0x233   :  { %v1508_v40 = vmax.f32 %v1458_v13, 0.0  ;;  %v1461_v19 = vadd.f32 %v1669_v60, %v1460_v27 }
 0x234   :  { %1526 = vst [vmem:[%s2633_s5 + $0x30] sm:$0xff] %v1510_v15  ;;  %v1511_v20 = vmax.f32 %v1469_v17, 0.0 }
 0x235   :  { %1524 = vst [vmem:[%s2633_s5 + $0x20] sm:$0xff] %v1508_v40  ;;  %v1509_v21 = vmax.f32 %v1461_v19, 0.0 }
 0x236   :  { %1527 = vst [vmem:[%s2633_s5 + $0x38] sm:$0xff] %v1511_v20 }
 0x237   :  { %1525 = vst [vmem:[%s2633_s5 + $0x28] sm:$0xff] %v1509_v21 }
 0x23f   :  { %v1976_v23 = vpop.f32.mrb[64].mxu1 }
 0x240   :  { %v1482_v26 = vadd.f32 %v1976_v23, %v1669_v60  ;;  %v1473_v28 = vpop.f32.mrb[65].mxu1 }
 0x241   :  { %v1474_v29 = vadd.f32 %v1669_v60, %v1473_v28  ;;  %v1977_v30 = vpop.f32.mrb[66].mxu1 }
 0x242   :  { %v1514_v31 = vmax.f32 %v1482_v26, 0.0  ;;  %v1485_v32 = vadd.f32 %v1977_v30, %v1669_v60  ;;  %v1476_v33 = vpop.f32.mrb[67].mxu1 }
 0x243   :  { %v1512_v43 = vmax.f32 %v1474_v29, 0.0  ;;  %v1477_v34 = vadd.f32 %v1669_v60, %v1476_v33 }
 0x244   :  { %1530 = vst [vmem:[%s2633_s5 + $0x50] sm:$0xff] %v1514_v31  ;;  %v1515_v35 = vmax.f32 %v1485_v32, 0.0 }
 0x245   :  { %1528 = vst [vmem:[%s2633_s5 + $0x40] sm:$0xff] %v1512_v43  ;;  %v1513_v54 = vmax.f32 %v1477_v34, 0.0 }
 0x246   :  { %1531 = vst [vmem:[%s2633_s5 + $0x58] sm:$0xff] %v1515_v35 }
 0x247   :  { %1529 = vst [vmem:[%s2633_s5 + $0x48] sm:$0xff] %v1513_v54 }
 0x24f   :  { %v1980_v36 = vpop.f32.mrb[68].mxu1 }
 0x250   :  { %v1498_v37 = vadd.f32 %v1980_v36, %v1669_v60  ;;  %v1489_v45 = vpop.f32.mrb[69].mxu1 }
 0x251   :  { %v1490_v10 = vadd.f32 %v1669_v60, %v1489_v45  ;;  %v1981_v39 = vpop.f32.mrb[70].mxu1 }
 0x252   :  { %v1518_v56 = vmax.f32 %v1498_v37, 0.0  ;;  %v1501_v41 = vadd.f32 %v1981_v39, %v1669_v60  ;;  %v1492_v42 = vpop.f32.mrb[71].mxu1 }
 0x253   :  { %v1516_v44 = vmax.f32 %v1490_v10, 0.0  ;;  %v1493_v46 = vadd.f32 %v1669_v60, %v1492_v42 }
 0x254   :  { %1534 = vst [vmem:[%s2633_s5 + $0x70] sm:$0xff] %v1518_v56  ;;  %v1519_v47 = vmax.f32 %v1501_v41, 0.0 }
 0x255   :  { %1532 = vst [vmem:[%s2633_s5 + $0x60] sm:$0xff] %v1516_v44  ;;  %v1517_v48 = vmax.f32 %v1493_v46, 0.0 }
 0x256   :  { %1535 = vst [vmem:[%s2633_s5 + $0x78] sm:$0xff] %v1519_v47 }
 0x257   :  { %1533 = vst [vmem:[%s2633_s5 + $0x68] sm:$0xff] %v1517_v48 }

</bundles_post_ra>
